<compile_context>
chip_gen: v7x
topology: tpu7x:2x2x1
jax: 0.10.0
libtpu: 0.0.40
codegen_flags: <defaults>
</compile_context>

<pallas_src>
import jax
import jax.numpy as jnp
from jax import lax
from jax.experimental import pallas as pl
from jax.experimental.pallas import tpu as pltpu


def _round_up(x: int, m: int) -> int:
    return ((x + m - 1) // m) * m


def _chip_kind() -> str:
    try:
        return jax.devices()[0].device_kind.lower()
    except Exception:
        return ""


def _vmem_capacity_bytes() -> int:
    try:
        return int(pltpu.get_tpu_info().vmem_capacity_bytes)
    except Exception:
        return 64 * 1024 * 1024   # conservative (v7x per-TC VMEM)


# ---------------------------------------------------------------------------
# Pallas hot path: ratings = sigmoid(users_emb @ items_emb.T)
# ---------------------------------------------------------------------------
def _score_kernel(u_ref, it_ref, o_ref):
    # u_ref : (tile_m, dim)   bf16 -- one tile of gathered user embeddings
    # it_ref: (tile_n, dim)   bf16 -- one tile of the item table (NATIVE layout)
    # o_ref : (tile_m, tile_n)     -- sigmoid(u @ it.T) for this (batch, item) tile
    scores = lax.dot_general(
        u_ref[...], it_ref[...],
        dimension_numbers=(((1,), (1,)), ((), ())),   # contract last dims (RHS transposed on MXU)
        preferred_element_type=jnp.float32)
    # sigmoid(x) = 1 / (1 + exp(-x)); exp + approx reciprocal both run on the EUP slot.
    o_ref[...] = pl.reciprocal(1.0 + jnp.exp(-scores), approx=True).astype(o_ref.dtype)


def prepare_item_table(items_emb, *, tile_n_target=4096):
    """Cast + (rarely) pad the item table once; reusable across many rate() calls.

    Returns (items_bf16_padded [Mp, dim], tile_n, m_item) with tile_n a multiple
    of 128 that exactly divides Mp, so the kernel output never needs an
    item-axis slice when m_item is already 128-aligned.
    """
    m_item, _ = items_emb.shape
    mp = _round_up(m_item, 128)
    target = _round_up(min(max(int(tile_n_target), 128), mp), 128)
    tile_n = 128
    for t in range(target, 127, -128):          # largest 128-multiple dividing mp
        if mp % t == 0:
            tile_n = t
            break
    items_bf = items_emb.astype(jnp.bfloat16)
    if mp != m_item:
        items_bf = jnp.pad(items_bf, ((0, mp - m_item), (0, 0)))
    return items_bf, tile_n, m_item


def lightgcn_rate(instances, users_emb, items_emb=None, *, items_prepped=None,
                  tile_m=None, tile_n_target=4096, out_dtype=jnp.bfloat16):
    """sigmoid(users_emb[instances] @ items_emb.T) via a tiled Pallas kernel.

    Pass `items_prepped = prepare_item_table(items_all)` to amortize the item
    cast/pad across many batches (e.g. full-catalog evaluation).
    """
    if items_prepped is None:
        items_prepped = prepare_item_table(items_emb, tile_n_target=tile_n_target)
    items_bf, tile_n, m_item = items_prepped
    Mp, dim = items_bf.shape

    # Glue: embedding lookup (gather). NOTE: jnp.take clamps out-of-range ids
    # silently (torch nn.Embedding would raise on them).
    users = jnp.take(users_emb, instances.astype(jnp.int32), axis=0)   # [B, dim]
    B = users.shape[0]
    users_bf = users.astype(jnp.bfloat16)     # tiny stream; f32 accumulate in-kernel

    if tile_m is None:
        tile_m = 128 if "v5" in _chip_kind() else 256   # v5e: 4x128x128 MXU geometry
    tile_m = min(tile_m, _round_up(B, 8))
    Bp = _round_up(B, tile_m)
    if Bp != B:
        users_bf = jnp.pad(users_bf, ((0, Bp - B), (0, 0)))

    grid = (Mp // tile_n, Bp // tile_m)       # items OUTER (parallel), batch INNER

    out_bytes = jnp.dtype(out_dtype).itemsize
    # Double-buffered tiles: output + item tile + user tile.
    vmem_est = 2 * (tile_m * tile_n * out_bytes + tile_n * dim * 2 + tile_m * dim * 2)
    vmem_cap = max(min(_vmem_capacity_bytes() * 3 // 4, 96 * 1024 * 1024), 16 * 1024 * 1024)
    vmem_limit = int(min(max(2 * vmem_est, 16 * 1024 * 1024), vmem_cap))

    # Guarantee the megacore split lands on the item axis when possible: items
    # are the leading "parallel" axis; mark batch "arbitrary" if items can split.
    batch_sem = "arbitrary" if grid[0] >= 2 else "parallel"

    cost = pl.CostEstimate(
        flops=2 * Bp * Mp * dim,
        transcendentals=Bp * Mp,                                   # one exp per output
        bytes_accessed=(grid[0] * Bp * dim * 2                     # user tiles re-streamed per item tile
                        + Mp * dim * 2                             # item table streamed once
                        + Bp * Mp * out_bytes),                    # output write
    )

    out = pl.pallas_call(
        _score_kernel,
        out_shape=jax.ShapeDtypeStruct((Bp, Mp), out_dtype),
        grid_spec=pltpu.PrefetchScalarGridSpec(
            num_scalar_prefetch=0,
            grid=grid,
            in_specs=[
                # user tile: indexed by the (inner) batch axis only.
                pl.BlockSpec((tile_m, dim), lambda j, i: (i, 0)),
                # item tile (native [m_item, dim] layout): indexed by the
                # (outer) item axis only -> DMA'd from HBM exactly once and
                # reused for every batch tile.
                pl.BlockSpec((tile_n, dim), lambda j, i: (j, 0)),
            ],
            out_specs=pl.BlockSpec((tile_m, tile_n), lambda j, i: (i, j)),
        ),
        compiler_params=pltpu.CompilerParams(
            dimension_semantics=("parallel", batch_sem),
            vmem_limit_bytes=vmem_limit,
        ),
        cost_estimate=cost,
    )(users_bf, items_bf)

    if Bp != B or Mp != m_item:
        out = out[:B, :m_item]
    return out


# ---------------------------------------------------------------------------
# LightGCN message passing (2-layer sparse propagation + mean), JAX glue.
# The Graph is a sparse COO normalized adjacency; irregular SpMM has no clean
# rectangular-BlockSpec Pallas equivalent, so it stays in plain JAX.
# TODO(synk): Pallas SpMM (scalar-prefetched CSR row offsets + manual DMA gather).
# ---------------------------------------------------------------------------
def _spmm(rows, cols, vals, x, n_total):
    return jnp.zeros((n_total, x.shape[1]), x.dtype).at[rows].add(vals[:, None] * x[cols])


def lightgcn_propagate(user_emb, item_emb, rows, cols, vals, *,
                       layers=2, dropout=0.0, train=False, key=None):
    n_user = user_emb.shape[0]
    all_emb = jnp.concatenate([user_emb, item_emb], axis=0)
    n_total = all_emb.shape[0]
    if train and dropout > 0.0:
        # torch __graph_dropout: keep each edge w.p. (1 - dropout), rescale kept values.
        keep = jax.random.uniform(key, vals.shape) >= dropout
        vals = jnp.where(keep, vals / (1.0 - dropout), 0.0)
    embs = [all_emb]
    e = all_emb
    for _ in range(layers):
        e = _spmm(rows, cols, vals, e, n_total)
        embs.append(e)
    light_out = jnp.mean(jnp.stack(embs, axis=1), axis=1)
    return light_out[:n_user], light_out[n_user:]


def lightgcn_forward(instances, user_emb, item_emb, rows, cols, vals, **rate_kwargs):
    users_all, items_all = lightgcn_propagate(user_emb, item_emb, rows, cols, vals)
    # Preprocess the item table once; reusable if scoring many instance batches.
    items_prepped = prepare_item_table(
        items_all, tile_n_target=rate_kwargs.pop("tile_n_target", 4096))
    return lightgcn_rate(instances, users_all, items_prepped=items_prepped, **rate_kwargs)


def xavier_normal(key, shape):
    fan_out, fan_in = shape   # nn.Embedding weight: [num_embeddings, dim]
    std = (2.0 / (fan_in + fan_out)) ** 0.5
    return std * jax.random.normal(key, shape, dtype=jnp.float32)


if __name__ == "__main__":
    # Small synthetic config (args.user_num / args.item_num / args.dim).
    n_user, m_item, dim = 64, 256, 32
    batch, num_edges = 8, 512

    key = jax.random.PRNGKey(0)
    k_u, k_i, k_eu, k_ei, k_idx = jax.random.split(key, 5)

    user_embedding = xavier_normal(k_u, (n_user, dim))   # nn.Embedding weight
    item_embedding = xavier_normal(k_i, (m_item, dim))   # nn.Embedding weight

    # Synthetic bipartite interaction graph with symmetric D^-1/2 A D^-1/2
    # normalization, stored as COO (rows, cols, vals) like torch.sparse.
    eu = jax.random.randint(k_eu, (num_edges,), 0, n_user, dtype=jnp.int32)
    ei = jax.random.randint(k_ei, (num_edges,), 0, m_item, dtype=jnp.int32) + n_user
    rows = jnp.concatenate([eu, ei])
    cols = jnp.concatenate([ei, eu])
    n_total = n_user + m_item
    deg = jnp.zeros((n_total,), jnp.float32).at[rows].add(1.0)
    deg = jnp.maximum(deg, 1.0)
    vals = 1.0 / jnp.sqrt(deg[rows] * deg[cols])

    instances = jax.random.randint(k_idx, (batch,), 0, n_user, dtype=jnp.int32)

    ratings = lightgcn_forward(instances, user_embedding, item_embedding,
                               rows, cols, vals)
    ratings = jax.block_until_ready(ratings)

    # Plain-JAX f32 reference for correctness (kernel streams bf16 operands,
    # accumulates in f32, emits bf16 ratings -> allow a small tolerance).
    users_all, items_all = lightgcn_propagate(user_embedding, item_embedding,
                                              rows, cols, vals)
    ref = jax.nn.sigmoid(users_all[instances] @ items_all.T)
    assert ratings.shape == (batch, m_item)
    assert jnp.allclose(ratings.astype(jnp.float32), ref, atol=2e-2, rtol=2e-2), \
        float(jnp.max(jnp.abs(ratings.astype(jnp.float32) - ref)))

    print("KERNEL_OK")
</pallas_src>

<mosaic_0001>
module attributes {stable_mosaic.version = 11 : i64} {
  func.func @_score_kernel(%arg0: i32, %arg1: i32, %arg2: memref<8x32xbf16, #tpu.memory_space<vmem>>, %arg3: memref<256x32xbf16, #tpu.memory_space<vmem>>, %arg4: memref<8x256xbf16, #tpu.memory_space<vmem>>) attributes {dimension_semantics = [#tpu.dimension_semantics<parallel>, #tpu.dimension_semantics<parallel>], iteration_bounds = array<i64: 1, 1>, scalar_prefetch = 0 : i64, scratch_operands = 0 : i64, tpu.core_type = #tpu.core_type<tc>, window_params = [{transform_indices = @transform_0, window_bounds = array<i64: 8, 32>}, {transform_indices = @transform_1, window_bounds = array<i64: 256, 32>}, {transform_indices = @transform_2, window_bounds = array<i64: 8, 256>}]} {
    %c0 = arith.constant 0 : index
    %c0_0 = arith.constant 0 : index
    %0 = vector.load %arg2[%c0, %c0_0] : memref<8x32xbf16, #tpu.memory_space<vmem>>, vector<8x32xbf16>
    %c0_1 = arith.constant 0 : index
    %c0_2 = arith.constant 0 : index
    %1 = vector.load %arg3[%c0_1, %c0_2] : memref<256x32xbf16, #tpu.memory_space<vmem>>, vector<256x32xbf16>
    %cst = arith.constant dense<0.000000e+00> : vector<8x256xf32>
    %2 = tpu.matmul %0, %1, %cst {dimension_numbers = #tpu.dot_dimension_numbers<[1], [1], [0], [0], [0, 0, 1, 0], [], []>} : vector<8x32xbf16>, vector<256x32xbf16>, vector<8x256xf32> -> vector<8x256xf32>
    %cst_3 = arith.constant 0.000000e+00 : f32
    %3 = vector.broadcast %cst_3 : f32 to vector<8x256xf32>
    %4 = arith.subf %3, %2 : vector<8x256xf32>
    %5 = math.exp %4 : vector<8x256xf32>
    %cst_4 = arith.constant 1.000000e+00 : f32
    %6 = vector.broadcast %cst_4 : f32 to vector<8x256xf32>
    %7 = arith.addf %6, %5 : vector<8x256xf32>
    %8 = tpu.reciprocal %7 {approx = true} : vector<8x256xf32> -> vector<8x256xf32>
    %9 = arith.truncf %8 : vector<8x256xf32> to vector<8x256xbf16>
    %c0_5 = arith.constant 0 : index
    %c0_6 = arith.constant 0 : index
    %10 = vector.load %arg4[%c0_5, %c0_6] : memref<8x256xbf16, #tpu.memory_space<vmem>>, vector<8x256xbf16>
    tpu.vector_store %arg4[%c0_5, %c0_6], %9 {strides = array<i32>} : memref<8x256xbf16, #tpu.memory_space<vmem>>, vector<8x256xbf16>,
    return
  }
  func.func @transform_0(%arg0: i32, %arg1: i32) -> (i32, i32) {
    %c0_i32 = arith.constant 0 : i32
    %c0_i32_0 = arith.constant 0 : i32
    return %arg1, %c0_i32 : i32, i32
  }
  func.func @transform_1(%arg0: i32, %arg1: i32) -> (i32, i32) {
    %c0_i32 = arith.constant 0 : i32
    %c0_i32_0 = arith.constant 0 : i32
    return %arg0, %c0_i32 : i32, i32
  }
  func.func @transform_2(%arg0: i32, %arg1: i32) -> (i32, i32) {
    %c0_i32 = arith.constant 0 : i32
    return %arg1, %arg0 : i32, i32
  }
}

</mosaic_0001>

<bundles_post_ra>
// kernel: tpu_custom_call.1
= control target key start
LH: loop header
LB: loop body
LE: loop exit
PB: predicated region body
PF: predicated region fallthrough
CT: control target
= control target key end

     0   :  { %vm126_vm0 = vcmask 261120   ;;  %s443_s0 = inlined_call_operand.vmem [shape: bf16[8,32], index: 0, kind: input, shape index: {}]   ;;  %s444_s1 = inlined_call_operand.vmem [shape: bf16[256,32], index: 1, kind: input, shape index: {}]   ;;  %s445_s2 = inlined_call_operand.hbm [shape: bf16[8,256], index: 2, kind: output, shape index: {}]  }
   0x1   :  { %v298_v0 = vld [vmem:[%s444_s1 + $0x40] sm:$0xff]   ;;  %v300_v2 = vld [vmem:[%s444_s1 + $0x48] sm:$0xff]   ;;  %v302_v6 = vld [vmem:[%s444_s1 + $0x50] sm:$0xff]  }
   0x2   :  { %v299_v1 = vld [vmem:[%s444_s1] sm:$0xff]   ;;  %289 = vmatprep.subr.msk.bf16.mxu0 %vm126_vm0, %v298_v0  ;;  %v301_v4 = vld [vmem:[%s444_s1 + $0x8] sm:$0xff]   ;;  %v303_v7 = vld [vmem:[%s444_s1 + $0x10] sm:$0xff]  }
   0x3   :  { %v131_v3 = vsel %vm126_vm0, %v299_v1, 0  ;;  %v134_v5 = vsel %vm126_vm0, %v301_v4, 0  ;;  %v13_v8 = vld [vmem:[%s443_s0] sm:$0xf] }
   0x4   :  { %272 = vmatpush3.bf16.xpose.msra.mxu0 %v131_v3 }
   0x5   :  { %290 = vmatprep.subr.msk.bf16.mxu0 %vm126_vm0, %v300_v2 }
   0xc   :  { %274 = vmatpush3.bf16.xpose.msra.mxu0 %v134_v5 }
   0xd   :  { %291 = vmatprep.subr.msk.bf16.mxu0 %vm126_vm0, %v302_v6 }
   0xe   :  { %7 = vsyncpa [#allocation3], 0  ;;  %v137_v9 = vsel %vm126_vm0, %v303_v7, 0  ;;  %v304_v10 = vld [vmem:[%s444_s1 + $0x58] sm:$0xff]   ;;  %287 = vmatprep.mubr.msk.bf16.mxu0 %vm126_vm0, %v13_v8  ;;  %v306_v13 = vld [vmem:[%s444_s1 + $0x60] sm:$0xff]  }
   0xf   :  { %v305_v11 = vld [vmem:[%s444_s1 + $0x18] sm:$0xff]   ;;  %v307_v14 = vld [vmem:[%s444_s1 + $0x20] sm:$0xff]   ;;  %v308_v16 = vld [vmem:[%s444_s1 + $0x68] sm:$0xff]  }
  0x10   :  { %v140_v12 = vsel %vm126_vm0, %v305_v11, 0  ;;  %v143_v15 = vsel %vm126_vm0, %v307_v14, 0  ;;  %v309_v17 = vld [vmem:[%s444_s1 + $0x28] sm:$0xff]   ;;  %v310_v19 = vld [vmem:[%s444_s1 + $0x70] sm:$0xff]   ;;  %v312_v22 = vld [vmem:[%s444_s1 + $0x78] sm:$0xff]  }
  0x11   :  { %v146_v18 = vsel %vm126_vm0, %v309_v17, 0  ;;  %v311_v20 = vld [vmem:[%s444_s1 + $0x30] sm:$0xff]   ;;  %v313_v23 = vld [vmem:[%s444_s1 + $0x38] sm:$0xff]   ;;  %s346_s1 = smov [#allocation2]  }
  0x12   :  { %v149_v21 = vsel %vm126_vm0, %v311_v20, 0  ;;  %v152_v24 = vsel %vm126_vm0, %v313_v23, 0  ;;  %s244_s14 = sshll.u32 %s346_s1, 4  ;;  %s245_s14 = int_to_ptr.vmem [resolvable:$true] %s244_s14 }
  0x13   :  { %s322_s15 = scalar_lea.vmem %s245_s14, 128  ;;  %p327_p1 = scmp.lt.s32.totalorder %s245_s14, %s245_s14 }
  0x14   :  { %276 = vmatpush3.bf16.xpose.msra.mxu0 %v137_v9  ;;  %p323_p0 = scmp.ne.s32.totalorder %s245_s14, %s322_s15  ;;  %p328_p2 = scmp.lt.s32.totalorder %s322_s15, %s322_s15 }
  0x15   :  { %292 = vmatprep.subr.msk.bf16.mxu0 %vm126_vm0, %v304_v10 }
  0x16   :  { %p329_p3 = por %p328_p2, %p327_p1 }
  0x18   :  { %p330_p4 = pnand %p329_p3, %p323_p0 }
  0x1c   :  { %278 = vmatpush3.bf16.xpose.msra.mxu0 %v140_v12 }
  0x1d   :  { %293 = vmatprep.subr.msk.bf16.mxu0 %vm126_vm0, %v306_v13 }
  0x24   :  { %280 = vmatpush3.bf16.xpose.msra.mxu0 %v143_v15 }
  0x25   :  { %294 = vmatprep.subr.msk.bf16.mxu0 %vm126_vm0, %v308_v16 }
  0x2c   :  { %282 = vmatpush3.bf16.xpose.msra.mxu0 %v146_v18 }
  0x2d   :  { %295 = vmatprep.subr.msk.bf16.mxu0 %vm126_vm0, %v310_v19 }
  0x34   :  { %284 = vmatpush3.bf16.xpose.msra.mxu0 %v149_v21 }
  0x35   :  { %296 = vmatprep.subr.msk.bf16.mxu0 %vm126_vm0, %v312_v22 }
  0x3c   :  { %286 = vmatpush3.bf16.xpose.msra.mxu0 %v152_v24 }
  0x43   :  { %288 = vmatmul.mubr.msk.bf16.vlgmr.msra.gmra.mrb[0].mxu0 %vm126_vm0, %v13_v8 }
 0x116   :  { %v212_v25 = vpop.f32.mrb[0].mxu0 }
 0x117   :  { %v219_v26 = vsub.f32 0.0, %v212_v25  ;;  %v214_v27 = vpop.f32.mrb[1].mxu0 }
 0x118   :  { %v220_v28 = vsub.f32 0.0, %v214_v27  ;;  %v216_v29 = vpop.f32.mrb[2].mxu0 }
 0x119   :  { %v221_v30 = vmul.f32 1.442695, %v219_v26  ;;  %v217_v31 = vpop.f32.mrb[3].mxu0 }
 0x11a   :  { %v223_v32 = vmul.f32 1.442695, %v220_v28 }
 0x11b   :  { %314 = vpow2.f32 %v221_v30 }
 0x11c   :  { %316 = vpow2.f32 %v223_v32 }
 0x125   :  { %v315_v33 = vpop.eup %314 }
 0x126   :  { %v317_v34 = vpop.eup %316  ;;  %v225_v35 = vadd.f32 1.0, %v315_v33 }
 0x127   :  { %v226_v36 = vadd.f32 1.0, %v317_v34 }
 0x128   :  { %318 = vrcp.f32 %v225_v35 }
 0x129   :  { %320 = vrcp.f32 %v226_v36 }
 0x132   :  { %v319_v37 = vpop.eup %318 }
 0x133   :  { %v321_v38 = vpop.eup %320 }
 0x134   :  { %v270_v39 = vpack.c.bf16 %v321_v38, %v319_v37 }
 0x136   :  { %237 = vst [vmem:[#allocation2] sm:$0xff] %v270_v39 }
 0x137   :  { %333 = shalt.err (!%p330_p4)
}
 0x138   :  { %s334_s18 = scalar_lea.hbm %s445_s2, 128 }
 0x139   :  { %p335_p5 = scmp.ne.s32.totalorder %s445_s2, %s334_s18  ;;  %p338_p6 = scmp.lt.u32.totalorder %s334_s18, %s445_s2 }
 0x13b   :  { %p340_p7 = pnand %p338_p6, %p335_p5 }
 0x13d   :  { %343 = shalt.err (!%p340_p7)
}
 0x13e   :  { %247 = dma.vmem_to_hbm [thread:$0]  %s245_s14, 128, %s445_s2, [#allocation3]  }
 0x13f   :  { %344 = dma.done.wait [#allocation3], 128  }
 0x140   :  { %345 = vsyncadd [#allocation3], 4294967168 }
 0x141   :  { %251 = vsyncpa [#allocation3], 1 }

</bundles_post_ra>
